<compile_context>
chip_gen: v6e
topology: v6e:2x2x1
jax: 0.10.0
libtpu: 0.0.40
codegen_flags: <defaults>
</compile_context>

<pallas_src>
import jax
import jax.numpy as jnp
from jax.experimental import pallas as pl
from jax.experimental.pallas import tpu as pltpu


def _dwt_kernel(x_ref, o_ref):
    # x_ref block: (1, 2, 2, rt, Wo) holding the four samples of each 2x2
    # stride-2 window: a=top-left, b=top-right, c=bottom-left, d=bottom-right.
    a = x_ref[0, 0, 0]
    b = x_ref[0, 0, 1]
    c = x_ref[0, 1, 0]
    d = x_ref[0, 1, 1]
    # Butterfly form of the Haar filters (matches F.conv2d with the
    # pre-flipped weights in DWT.__init__):
    s = a + b
    t = c + d
    u = a - b
    v = c - d
    o_ref[0, 0] = 0.5 * (s + t)   # LL = 0.5*( a + b + c + d)
    o_ref[0, 1] = 0.5 * (s - t)   # LH = 0.5*( a + b - c - d)
    o_ref[0, 2] = 0.5 * (u + v)   # HL = 0.5*( a - b + c - d)
    o_ref[0, 3] = 0.5 * (u - v)   # HH = 0.5*( a - b - c + d)


@jax.jit
def dwt_pallas(x):
    """x: (N, C, H, W) with even H, W. Returns (N, 4*C, H//2, W//2)."""
    N, C, H, W = x.shape
    if H % 2 or W % 2:
        raise ValueError(f"DWT requires even H and W, got {(H, W)}")
    Ho, Wo = H // 2, W // 2
    NC = N * C
    itemsize = jnp.dtype(x.dtype).itemsize

    # One-pass de-interleave of the 2x2 stride-2 windows (free reshape +
    # single XLA transpose): xt[nc, i, j, ho, wo] = x[n, c, 2*ho+i, 2*wo+j].
    xt = jnp.transpose(x.reshape(NC, Ho, 2, Wo, 2), (0, 2, 4, 1, 3))

    # Row-tile: 4 input planes + 4 sub-band planes per output row; keep the
    # per-step working set around ~2 MiB (~4 MiB double-buffered) so every
    # generation's scoped-VMEM default has ample headroom.
    sub = 8 if itemsize >= 4 else (16 if itemsize == 2 else 32)
    bytes_per_row = 8 * Wo * itemsize
    rt = min(Ho, max(sub, (2 * 1024 * 1024) // max(bytes_per_row, 1)))
    if rt < Ho:
        rt = max(sub, (rt // sub) * sub)
    n_h_blocks = pl.cdiv(Ho, rt)

    y = pl.pallas_call(
        _dwt_kernel,
        out_shape=jax.ShapeDtypeStruct((NC, 4, Ho, Wo), x.dtype),
        grid=(NC, n_h_blocks),
        in_specs=[
            pl.BlockSpec((1, 2, 2, rt, Wo), lambda nc, h: (nc, 0, 0, h, 0)),
        ],
        out_specs=pl.BlockSpec((1, 4, rt, Wo), lambda nc, h: (nc, 0, h, 0)),
        compiler_params=pltpu.CompilerParams(
            dimension_semantics=("parallel", "parallel"),
        ),
        cost_estimate=pl.CostEstimate(
            flops=12 * NC * Ho * Wo,
            transcendentals=0,
            bytes_accessed=2 * x.size * itemsize,
        ),
    )(xt)

    # Free contiguous reshape: output channel 4*c + f, f in [LL, LH, HL, HH],
    # matching torch.cat([weight]*C, dim=0) with groups=C.
    return y.reshape(N, 4 * C, Ho, Wo)


def dwt_reference(x):
    """Pure-JAX reference that mirrors the PyTorch module exactly."""
    C = x.shape[1]
    ll = jnp.array([[0.5, 0.5], [0.5, 0.5]], dtype=x.dtype)
    lh = jnp.array([[-0.5, -0.5], [0.5, 0.5]], dtype=x.dtype)
    hl = jnp.array([[-0.5, 0.5], [-0.5, 0.5]], dtype=x.dtype)
    hh = jnp.array([[0.5, -0.5], [-0.5, 0.5]], dtype=x.dtype)
    filts = jnp.stack(
        [ll[::-1, ::-1][None], lh[::-1, ::-1][None],
         hl[::-1, ::-1][None], hh[::-1, ::-1][None]],
        axis=0,
    )  # (4, 1, 2, 2) -- deterministic constant weights (no checkpoint)
    filters = jnp.concatenate([filts] * C, axis=0)  # (4C, 1, 2, 2)
    return jax.lax.conv_general_dilated(
        x, filters, window_strides=(2, 2), padding="VALID",
        feature_group_count=C,
        dimension_numbers=("NCHW", "OIHW", "NCHW"),
    )


if __name__ == "__main__":
    key = jax.random.PRNGKey(0)
    N, C, H, W = 2, 4, 16, 16
    x = jax.random.normal(key, (N, C, H, W), dtype=jnp.float32)

    y = dwt_pallas(x)
    jax.block_until_ready(y)

    y_ref = dwt_reference(x)
    assert y.shape == (N, 4 * C, H // 2, W // 2), y.shape
    assert jnp.allclose(y, y_ref, atol=1e-5, rtol=1e-5), "mismatch vs reference"

    print("KERNEL_OK")
</pallas_src>

<mosaic_0001>
module attributes {stable_mosaic.version = 11 : i64} {
  func.func @_dwt_kernel(%arg0: i32, %arg1: i32, %arg2: memref<1x2x2x8x8xf32, #tpu.memory_space<vmem>>, %arg3: memref<1x4x8x8xf32, #tpu.memory_space<vmem>>) attributes {dimension_semantics = [#tpu.dimension_semantics<parallel>, #tpu.dimension_semantics<parallel>], iteration_bounds = array<i64: 8, 1>, scalar_prefetch = 0 : i64, scratch_operands = 0 : i64, tpu.core_type = #tpu.core_type<tc>, window_params = [{transform_indices = @transform_0, window_bounds = array<i64: 1, 2, 2, 8, 8>}, {transform_indices = @transform_1, window_bounds = array<i64: 1, 4, 8, 8>}]} {
    %c0 = arith.constant 0 : index
    %c0_0 = arith.constant 0 : index
    %c0_1 = arith.constant 0 : index
    %c0_2 = arith.constant 0 : index
    %c0_3 = arith.constant 0 : index
    %0 = vector.load %arg2[%c0, %c0_0, %c0_1, %c0_2, %c0_3] : memref<1x2x2x8x8xf32, #tpu.memory_space<vmem>>, vector<1x1x1x8x8xf32>
    %1 = vector.shape_cast %0 : vector<1x1x1x8x8xf32> to vector<8x8xf32>
    %c0_4 = arith.constant 0 : index
    %c0_5 = arith.constant 0 : index
    %c1 = arith.constant 1 : index
    %c0_6 = arith.constant 0 : index
    %c0_7 = arith.constant 0 : index
    %2 = vector.load %arg2[%c0_4, %c0_5, %c1, %c0_6, %c0_7] : memref<1x2x2x8x8xf32, #tpu.memory_space<vmem>>, vector<1x1x1x8x8xf32>
    %3 = vector.shape_cast %2 : vector<1x1x1x8x8xf32> to vector<8x8xf32>
    %c0_8 = arith.constant 0 : index
    %c1_9 = arith.constant 1 : index
    %c0_10 = arith.constant 0 : index
    %c0_11 = arith.constant 0 : index
    %c0_12 = arith.constant 0 : index
    %4 = vector.load %arg2[%c0_8, %c1_9, %c0_10, %c0_11, %c0_12] : memref<1x2x2x8x8xf32, #tpu.memory_space<vmem>>, vector<1x1x1x8x8xf32>
    %5 = vector.shape_cast %4 : vector<1x1x1x8x8xf32> to vector<8x8xf32>
    %c0_13 = arith.constant 0 : index
    %c1_14 = arith.constant 1 : index
    %c1_15 = arith.constant 1 : index
    %c0_16 = arith.constant 0 : index
    %c0_17 = arith.constant 0 : index
    %6 = vector.load %arg2[%c0_13, %c1_14, %c1_15, %c0_16, %c0_17] : memref<1x2x2x8x8xf32, #tpu.memory_space<vmem>>, vector<1x1x1x8x8xf32>
    %7 = vector.shape_cast %6 : vector<1x1x1x8x8xf32> to vector<8x8xf32>
    %8 = arith.addf %1, %3 : vector<8x8xf32>
    %9 = arith.addf %5, %7 : vector<8x8xf32>
    %10 = arith.subf %1, %3 : vector<8x8xf32>
    %11 = arith.subf %5, %7 : vector<8x8xf32>
    %12 = arith.addf %8, %9 : vector<8x8xf32>
    %cst = arith.constant 5.000000e-01 : f32
    %13 = vector.broadcast %cst : f32 to vector<8x8xf32>
    %14 = arith.mulf %13, %12 : vector<8x8xf32>
    %c0_18 = arith.constant 0 : index
    %c0_19 = arith.constant 0 : index
    %c0_20 = arith.constant 0 : index
    %c0_21 = arith.constant 0 : index
    %15 = vector.load %arg3[%c0_18, %c0_19, %c0_20, %c0_21] : memref<1x4x8x8xf32, #tpu.memory_space<vmem>>, vector<1x1x8x8xf32>
    %16 = vector.shape_cast %15 : vector<1x1x8x8xf32> to vector<8x8xf32>
    %17 = vector.shape_cast %14 : vector<8x8xf32> to vector<1x1x8x8xf32>
    tpu.vector_store %arg3[%c0_18, %c0_19, %c0_20, %c0_21], %17 {strides = array<i32>} : memref<1x4x8x8xf32, #tpu.memory_space<vmem>>, vector<1x1x8x8xf32>,
    %18 = arith.subf %8, %9 : vector<8x8xf32>
    %cst_22 = arith.constant 5.000000e-01 : f32
    %19 = vector.broadcast %cst_22 : f32 to vector<8x8xf32>
    %20 = arith.mulf %19, %18 : vector<8x8xf32>
    %c0_23 = arith.constant 0 : index
    %c1_24 = arith.constant 1 : index
    %c0_25 = arith.constant 0 : index
    %c0_26 = arith.constant 0 : index
    %21 = vector.load %arg3[%c0_23, %c1_24, %c0_25, %c0_26] : memref<1x4x8x8xf32, #tpu.memory_space<vmem>>, vector<1x1x8x8xf32>
    %22 = vector.shape_cast %21 : vector<1x1x8x8xf32> to vector<8x8xf32>
    %23 = vector.shape_cast %20 : vector<8x8xf32> to vector<1x1x8x8xf32>
    tpu.vector_store %arg3[%c0_23, %c1_24, %c0_25, %c0_26], %23 {strides = array<i32>} : memref<1x4x8x8xf32, #tpu.memory_space<vmem>>, vector<1x1x8x8xf32>,
    %24 = arith.addf %10, %11 : vector<8x8xf32>
    %cst_27 = arith.constant 5.000000e-01 : f32
    %25 = vector.broadcast %cst_27 : f32 to vector<8x8xf32>
    %26 = arith.mulf %25, %24 : vector<8x8xf32>
    %c0_28 = arith.constant 0 : index
    %c2 = arith.constant 2 : index
    %c0_29 = arith.constant 0 : index
    %c0_30 = arith.constant 0 : index
    %27 = vector.load %arg3[%c0_28, %c2, %c0_29, %c0_30] : memref<1x4x8x8xf32, #tpu.memory_space<vmem>>, vector<1x1x8x8xf32>
    %28 = vector.shape_cast %27 : vector<1x1x8x8xf32> to vector<8x8xf32>
    %29 = vector.shape_cast %26 : vector<8x8xf32> to vector<1x1x8x8xf32>
    tpu.vector_store %arg3[%c0_28, %c2, %c0_29, %c0_30], %29 {strides = array<i32>} : memref<1x4x8x8xf32, #tpu.memory_space<vmem>>, vector<1x1x8x8xf32>,
    %30 = arith.subf %10, %11 : vector<8x8xf32>
    %cst_31 = arith.constant 5.000000e-01 : f32
    %31 = vector.broadcast %cst_31 : f32 to vector<8x8xf32>
    %32 = arith.mulf %31, %30 : vector<8x8xf32>
    %c0_32 = arith.constant 0 : index
    %c3 = arith.constant 3 : index
    %c0_33 = arith.constant 0 : index
    %c0_34 = arith.constant 0 : index
    %33 = vector.load %arg3[%c0_32, %c3, %c0_33, %c0_34] : memref<1x4x8x8xf32, #tpu.memory_space<vmem>>, vector<1x1x8x8xf32>
    %34 = vector.shape_cast %33 : vector<1x1x8x8xf32> to vector<8x8xf32>
    %35 = vector.shape_cast %32 : vector<8x8xf32> to vector<1x1x8x8xf32>
    tpu.vector_store %arg3[%c0_32, %c3, %c0_33, %c0_34], %35 {strides = array<i32>} : memref<1x4x8x8xf32, #tpu.memory_space<vmem>>, vector<1x1x8x8xf32>,
    return
  }
  func.func @transform_0(%arg0: i32, %arg1: i32) -> (i32, i32, i32, i32, i32) {
    %c0_i32 = arith.constant 0 : i32
    %c0_i32_0 = arith.constant 0 : i32
    %c0_i32_1 = arith.constant 0 : i32
    %c0_i32_2 = arith.constant 0 : i32
    return %arg0, %c0_i32, %c0_i32_0, %arg1, %c0_i32_1 : i32, i32, i32, i32, i32
  }
  func.func @transform_1(%arg0: i32, %arg1: i32) -> (i32, i32, i32, i32) {
    %c0_i32 = arith.constant 0 : i32
    %c0_i32_0 = arith.constant 0 : i32
    %c0_i32_1 = arith.constant 0 : i32
    return %arg0, %c0_i32, %arg1, %c0_i32_0 : i32, i32, i32, i32
  }
}

</mosaic_0001>

<bundles_post_ra>
// kernel: dwt_pallas.1
= control target key start
LH: loop header
LB: loop body
LE: loop exit
PB: predicated region body
PF: predicated region fallthrough
CT: control target
= control target key end

     0   :  { %s335_s6 = smov 0   ;;  %s337_s7 = smov 0   ;;  %s368_s0 = inlined_call_operand.vmem [shape: f32[8,2,2,8,8], index: 0, kind: input, shape index: {}]   ;;  %s369_s1 = inlined_call_operand.vmem [shape: f32[8,4,8,8], index: 1, kind: output, shape index: {}]  }
   0x1   :  { %s339_s8 = smov 0  }
   0x2 LB: > { %s23_s9 = sadd.s32 1, %s319_s7  ;;  %p262_p0 = scmp.ge.s32.totalorder %s323_s8, 1  ;;  %s323_s8 = sphi %s339_s8, %s11_s8   ;;  %s319_s7 = sphi %s337_s7, %s371_s7   ;;  %s315_s6 = sphi %s335_s6, %s370_s6  }
   0x3   : > { %p25_p1 = scmp.ge.s32.totalorder %s23_s9, 8  ;;  %p106_p2 = scmp.lt.s32.totalorder %s323_s8, 9 }
   0x5   : > { %s373_s9 = smov (%p25_p1, %s23_s9), 0  ;;  %p107_p3 = pnand %p262_p0, %p106_p2 }
   0x6   : > { %p132_p4 = scmp.lt.s32.totalorder (!%p107_p3), %s315_s6, 7 }
   0x7   : > { %110 = sbr.rel (%p107_p3) target bundleno = 25 (0x19), region = 24 }
   0xc   : > { %s375_s6 = smov (!%p132_p4, %s315_s6), 7  ;;  %vm161_vm0 = vcmask 64512  }
   0xd   : > { %s275_s10 = sshll.u32 %s375_s6, 5 }
   0xe   : > { %s139_s13 = scalar_lea.vmem %s368_s0, %s275_s10  ;;  %s147_s16 = scalar_lea.vmem %s369_s1, %s275_s10 }
   0xf   : > { %v148_v0 = vld [vmem:[%s139_s13] sm:$0xff]  ;;  %v267_v1 = vld [vmem:[%s139_s13 + $0x8] sm:$0xff]  ;;  %v268_v2 = vld [vmem:[%s139_s13 + $0x10] sm:$0xff] }
  0x10   : > { %v269_v3 = vld [vmem:[%s139_s13 + $0x18] sm:$0xff]  ;;  %v155_v4 = vadd.f32 %v267_v1, %v148_v0  ;;  %v157_v5 = vsub.f32 %v148_v0, %v267_v1 }
  0x11   : > { %v156_v6 = vadd.f32 %v269_v3, %v268_v2  ;;  %v158_v7 = vsub.f32 %v268_v2, %v269_v3 }
  0x13   : > { %v159_v8 = vadd.f32 %v156_v6, %v155_v4  ;;  %v163_v9 = vsub.f32 %v155_v4, %v156_v6  ;;  %v167_v10 = vadd.f32 %v158_v7, %v157_v5  ;;  %v171_v11 = vsub.f32 %v157_v5, %v158_v7 }
  0x15   : > { %v160_v12 = vmul.f32 0.5, %v159_v8  ;;  %v164_v13 = vmul.f32 0.5, %v163_v9  ;;  %v168_v14 = vmul.f32 0.5, %v167_v10  ;;  %v172_v15 = vmul.f32 0.5, %v171_v11 }
  0x17   : > { %162 = vst.msk [vmem:[%s147_s16] sm:$0xff] %vm161_vm0, %v160_v12  ;;  %270 = vst.msk [vmem:[%s147_s16 + $0x8] sm:$0xff] %vm161_vm0, %v164_v13 }
  0x18   : > { %271 = vst.msk [vmem:[%s147_s16 + $0x10] sm:$0xff] %vm161_vm0, %v168_v14  ;;  %272 = vst.msk [vmem:[%s147_s16 + $0x18] sm:$0xff] %vm161_vm0, %v172_v15 }
  0x19 PF: > { %s11_s8 = sadd.s32 1, %s323_s8   ;;  %s370_s6 = smov %s319_s7 }
  0x1a   : > { %p8_p5 = scmp.ge.s32.totalorder %s11_s8, 10   ;;  %s371_s7 = smov %s373_s9 }
  0x1c   :  { %10 = sbr.rel (!%p8_p5) target bundleno = 2 (0x2), region = 60 }

</bundles_post_ra>
